<compile_context>
chip_gen: v7x
topology: tpu7x:2x2x1
jax: 0.10.0
libtpu: 0.0.40
codegen_flags: <defaults>
</compile_context>

<pallas_src>
import functools

import jax
import jax.numpy as jnp
from jax import lax
from jax.experimental import pallas as pl
from jax.experimental.pallas import tpu as pltpu

_NEG_BIG = -1e30  # effectively -inf for f32 exp, without inf-inf hazards


def _round_up(x, m):
    return (x + m - 1) // m * m


def _infonce_kernel(seg_ref, bat_ref, lab_ref, out_ref,
                    m_sc, l_sc, lab_sc, *, inv_temp, b_actual, tile_b):
    j = pl.program_id(1)

    @pl.when(j == 0)
    def _init():
        m_sc[...] = jnp.full_like(m_sc, _NEG_BIG)
        l_sc[...] = jnp.zeros_like(l_sc)
        lab_sc[...] = jnp.zeros_like(lab_sc)

    # (TILE_S, D) x (TILE_B, D) contracted over D -> (TILE_S, TILE_B), f32 on MXU.
    sim = lax.dot_general(
        seg_ref[...], bat_ref[...],
        dimension_numbers=(((1,), (1,)), ((), ())),
        preferred_element_type=jnp.float32)
    logits = sim * inv_temp

    # Mask padded key columns (global column index >= true B).
    col = lax.broadcasted_iota(jnp.int32, logits.shape, 1) + j * tile_b
    logits = jnp.where(col < b_actual, logits, _NEG_BIG)

    # Online logsumexp update.
    m_prev = m_sc[...]
    m_curr = jnp.max(logits, axis=1, keepdims=True)
    m_new = jnp.maximum(m_prev, m_curr)
    alpha = jnp.exp(m_prev - m_new)
    l_sc[...] = alpha * l_sc[...] + jnp.sum(jnp.exp(logits - m_new),
                                            axis=1, keepdims=True)
    m_sc[...] = m_new

    # Gather logits[i, labels[i]] via a one-hot mask; each row's label column
    # lives in exactly one B tile, so accumulating the masked sum is exact.
    lab_hit = col == lab_ref[...]
    lab_sc[...] = lab_sc[...] + jnp.sum(jnp.where(lab_hit, logits, 0.0),
                                        axis=1, keepdims=True)

    @pl.when(j == pl.num_programs(1) - 1)
    def _finalize():
        # loss_i = logsumexp_i - logit_label_i
        out_ref[...] = m_sc[...] + jnp.log(l_sc[...]) - lab_sc[...]


def segmented_batch_infonce_loss(segment_output1, batch_output2, labels,
                                 temperature=0.05):
    S, D = segment_output1.shape
    B, D2 = batch_output2.shape
    assert D == D2 and S > 0 and B > 0

    # Tile sizes: lane-aligned B tiles (x128), sublane-aligned S tiles (x8).
    tile_s = min(256, _round_up(S, 8))
    tile_b = min(512, _round_up(B, 128))
    s_pad = _round_up(S, tile_s)
    b_pad = _round_up(B, tile_b)

    seg = segment_output1
    bat = batch_output2
    lab = labels.astype(jnp.int32).reshape(S, 1)
    if s_pad != S:
        seg = jnp.pad(seg, ((0, s_pad - S), (0, 0)))
        lab = jnp.pad(lab, ((0, s_pad - S), (0, 0)))
    if b_pad != B:
        bat = jnp.pad(bat, ((0, b_pad - B), (0, 0)))

    kernel = functools.partial(
        _infonce_kernel,
        inv_temp=float(1.0 / temperature),
        b_actual=B,
        tile_b=tile_b,
    )

    dtype_bytes = jnp.dtype(segment_output1.dtype).itemsize
    cost = pl.CostEstimate(
        flops=2 * S * B * D,
        transcendentals=S * B,
        bytes_accessed=(S * D + B * D) * dtype_bytes + S * 4,
    )

    per_row = pl.pallas_call(
        kernel,
        out_shape=jax.ShapeDtypeStruct((s_pad, 1), jnp.float32),
        grid_spec=pltpu.PrefetchScalarGridSpec(
            num_scalar_prefetch=0,
            grid=(s_pad // tile_s, b_pad // tile_b),
            in_specs=[
                pl.BlockSpec((tile_s, D), lambda i, j: (i, 0)),   # seg tile
                pl.BlockSpec((tile_b, D), lambda i, j: (j, 0)),   # key tile
                pl.BlockSpec((tile_s, 1), lambda i, j: (i, 0)),   # labels
            ],
            out_specs=pl.BlockSpec((tile_s, 1), lambda i, j: (i, 0)),
            scratch_shapes=[
                pltpu.VMEM((tile_s, 1), jnp.float32),   # running max
                pltpu.VMEM((tile_s, 1), jnp.float32),   # running exp-sum
                pltpu.VMEM((tile_s, 1), jnp.float32),   # label logit
            ],
        ),
        compiler_params=pltpu.CompilerParams(
            dimension_semantics=("parallel", "arbitrary")),
        cost_estimate=cost,
    )(seg, bat, lab)

    # Drop padded rows and take the mean over the true segment size.
    return jnp.sum(per_row[:S, 0]) / S


def _reference(segment_output1, batch_output2, labels, temperature=0.05):
    # Pure-JAX reference mirroring the PyTorch code literally.
    logits = (segment_output1 @ batch_output2.T) / temperature
    s = segment_output1.shape[0]
    numer = jnp.exp(logits[jnp.arange(s), labels])[:, None]
    denom = jnp.sum(jnp.exp(logits), axis=1, keepdims=True)
    return -jnp.log(numer / denom).mean()


if __name__ == "__main__":
    # Small deterministic inputs: segment=8, batch=16, hidden=32.
    S, B, D = 8, 16, 32
    key = jax.random.PRNGKey(0)
    k1, k2, k3 = jax.random.split(key, 3)
    segment_output1 = jax.random.normal(k1, (S, D), dtype=jnp.float32)
    batch_output2 = jax.random.normal(k2, (B, D), dtype=jnp.float32)
    # L2-normalize embeddings (standard for contrastive losses). This also keeps
    # the *naive* reference's exp() inside f32 range; the kernel itself is
    # overflow-safe regardless (stable logsumexp).
    segment_output1 = segment_output1 / jnp.linalg.norm(
        segment_output1, axis=1, keepdims=True)
    batch_output2 = batch_output2 / jnp.linalg.norm(
        batch_output2, axis=1, keepdims=True)
    labels = jax.random.randint(k3, (S,), 0, B, dtype=jnp.int32)

    loss = segmented_batch_infonce_loss(segment_output1, batch_output2, labels)
    loss = jax.block_until_ready(loss)

    ref = _reference(segment_output1, batch_output2, labels)
    assert jnp.allclose(loss, ref, rtol=1e-4, atol=1e-4), (loss, ref)

    print("KERNEL_OK")
</pallas_src>

<mosaic_0001>
module attributes {stable_mosaic.version = 11 : i64} {
  func.func @_infonce_kernel(%arg0: i32, %arg1: i32, %arg2: memref<8x32xf32, #tpu.memory_space<vmem>>, %arg3: memref<128x32xf32, #tpu.memory_space<vmem>>, %arg4: memref<8x1xi32, #tpu.memory_space<vmem>>, %arg5: memref<8x1xf32, #tpu.memory_space<vmem>>, %arg6: memref<8x1xf32, #tpu.memory_space<vmem>>, %arg7: memref<8x1xf32, #tpu.memory_space<vmem>>, %arg8: memref<8x1xf32, #tpu.memory_space<vmem>>) attributes {dimension_semantics = [#tpu.dimension_semantics<parallel>, #tpu.dimension_semantics<arbitrary>], iteration_bounds = array<i64: 1, 1>, scalar_prefetch = 0 : i64, scratch_operands = 3 : i64, tpu.core_type = #tpu.core_type<tc>, window_params = [{transform_indices = @transform_0, window_bounds = array<i64: 8, 32>}, {transform_indices = @transform_1, window_bounds = array<i64: 128, 32>}, {transform_indices = @transform_2, window_bounds = array<i64: 8, 1>}, {transform_indices = @transform_3, window_bounds = array<i64: 8, 1>}]} {
    %c0_i32 = arith.constant 0 : i32
    %0 = arith.cmpi eq, %arg1, %c0_i32 : i32
    %1 = arith.extui %0 : i1 to i32
    %c0_i32_0 = arith.constant 0 : i32
    %2 = arith.cmpi ne, %1, %c0_i32_0 : i32
    scf.if %2 {
      %cst_26 = arith.constant -1.000000e+30 : f32
      %45 = vector.broadcast %cst_26 : f32 to vector<8x1xf32>
      %c0_27 = arith.constant 0 : index
      %c0_28 = arith.constant 0 : index
      %46 = vector.load %arg6[%c0_27, %c0_28] : memref<8x1xf32, #tpu.memory_space<vmem>>, vector<8x1xf32>
      tpu.vector_store %arg6[%c0_27, %c0_28], %45 {strides = array<i32>} : memref<8x1xf32, #tpu.memory_space<vmem>>, vector<8x1xf32>,
      %cst_29 = arith.constant 0.000000e+00 : f32
      %47 = vector.broadcast %cst_29 : f32 to vector<8x1xf32>
      %c0_30 = arith.constant 0 : index
      %c0_31 = arith.constant 0 : index
      %48 = vector.load %arg7[%c0_30, %c0_31] : memref<8x1xf32, #tpu.memory_space<vmem>>, vector<8x1xf32>
      tpu.vector_store %arg7[%c0_30, %c0_31], %47 {strides = array<i32>} : memref<8x1xf32, #tpu.memory_space<vmem>>, vector<8x1xf32>,
      %cst_32 = arith.constant 0.000000e+00 : f32
      %49 = vector.broadcast %cst_32 : f32 to vector<8x1xf32>
      %c0_33 = arith.constant 0 : index
      %c0_34 = arith.constant 0 : index
      %50 = vector.load %arg8[%c0_33, %c0_34] : memref<8x1xf32, #tpu.memory_space<vmem>>, vector<8x1xf32>
      tpu.vector_store %arg8[%c0_33, %c0_34], %49 {strides = array<i32>} : memref<8x1xf32, #tpu.memory_space<vmem>>, vector<8x1xf32>,
    } else {
    }
    %c0 = arith.constant 0 : index
    %c0_1 = arith.constant 0 : index
    %3 = vector.load %arg2[%c0, %c0_1] : memref<8x32xf32, #tpu.memory_space<vmem>>, vector<8x32xf32>
    %c0_2 = arith.constant 0 : index
    %c0_3 = arith.constant 0 : index
    %4 = vector.load %arg3[%c0_2, %c0_3] : memref<128x32xf32, #tpu.memory_space<vmem>>, vector<128x32xf32>
    %cst = arith.constant dense<0.000000e+00> : vector<8x128xf32>
    %5 = tpu.matmul %3, %4, %cst {dimension_numbers = #tpu.dot_dimension_numbers<[1], [1], [0], [0], [0, 0, 1, 0], [], []>} : vector<8x32xf32>, vector<128x32xf32>, vector<8x128xf32> -> vector<8x128xf32>
    %cst_4 = arith.constant 2.000000e+01 : f32
    %6 = vector.broadcast %cst_4 : f32 to vector<8x128xf32>
    %7 = arith.mulf %5, %6 : vector<8x128xf32>
    %8 = tpu.iota {dimensions = array<i32: 1>} : vector<8x128xi32>
    %c128_i32 = arith.constant 128 : i32
    %9 = arith.muli %arg1, %c128_i32 : i32
    %10 = vector.broadcast %9 : i32 to vector<8x128xi32>
    %11 = arith.addi %8, %10 : vector<8x128xi32>
    %c16_i32 = arith.constant 16 : i32
    %12 = vector.broadcast %c16_i32 : i32 to vector<8x128xi32>
    %13 = arith.cmpi slt, %11, %12 : vector<8x128xi32>
    %cst_5 = arith.constant -1.000000e+30 : f32
    %14 = vector.broadcast %cst_5 : f32 to vector<8x128xf32>
    %15 = arith.select %13, %7, %14 : vector<8x128xi1>, vector<8x128xf32>
    %c0_6 = arith.constant 0 : index
    %c0_7 = arith.constant 0 : index
    %16 = vector.load %arg6[%c0_6, %c0_7] : memref<8x1xf32, #tpu.memory_space<vmem>>, vector<8x1xf32>
    %cst_8 = arith.constant dense<0xFF800000> : vector<8xf32>
    %17 = vector.multi_reduction <maximumf>, %15, %cst_8 [1] : vector<8x128xf32> to vector<8xf32>
    %18 = vector.shape_cast %17 : vector<8xf32> to vector<8x1xf32>
    %19 = arith.maximumf %16, %18 : vector<8x1xf32>
    %20 = arith.subf %16, %19 : vector<8x1xf32>
    %21 = math.exp %20 : vector<8x1xf32>
    %c0_9 = arith.constant 0 : index
    %c0_10 = arith.constant 0 : index
    %22 = vector.load %arg7[%c0_9, %c0_10] : memref<8x1xf32, #tpu.memory_space<vmem>>, vector<8x1xf32>
    %23 = arith.mulf %21, %22 : vector<8x1xf32>
    %24 = vector.broadcast %19 : vector<8x1xf32> to vector<8x128xf32>
    %25 = arith.subf %15, %24 : vector<8x128xf32>
    %26 = math.exp %25 : vector<8x128xf32>
    %cst_11 = arith.constant dense<0.000000e+00> : vector<8xf32>
    %27 = vector.multi_reduction <add>, %26, %cst_11 [1] : vector<8x128xf32> to vector<8xf32>
    %28 = vector.shape_cast %27 : vector<8xf32> to vector<8x1xf32>
    %29 = arith.addf %23, %28 : vector<8x1xf32>
    %c0_12 = arith.constant 0 : index
    %c0_13 = arith.constant 0 : index
    %30 = vector.load %arg7[%c0_12, %c0_13] : memref<8x1xf32, #tpu.memory_space<vmem>>, vector<8x1xf32>
    tpu.vector_store %arg7[%c0_12, %c0_13], %29 {strides = array<i32>} : memref<8x1xf32, #tpu.memory_space<vmem>>, vector<8x1xf32>,
    %c0_14 = arith.constant 0 : index
    %c0_15 = arith.constant 0 : index
    %31 = vector.load %arg6[%c0_14, %c0_15] : memref<8x1xf32, #tpu.memory_space<vmem>>, vector<8x1xf32>
    tpu.vector_store %arg6[%c0_14, %c0_15], %19 {strides = array<i32>} : memref<8x1xf32, #tpu.memory_space<vmem>>, vector<8x1xf32>,
    %c0_16 = arith.constant 0 : index
    %c0_17 = arith.constant 0 : index
    %32 = vector.load %arg4[%c0_16, %c0_17] : memref<8x1xi32, #tpu.memory_space<vmem>>, vector<8x1xi32>
    %33 = vector.broadcast %32 : vector<8x1xi32> to vector<8x128xi32>
    %34 = arith.cmpi eq, %11, %33 : vector<8x128xi32>
    %c0_18 = arith.constant 0 : index
    %c0_19 = arith.constant 0 : index
    %35 = vector.load %arg8[%c0_18, %c0_19] : memref<8x1xf32, #tpu.memory_space<vmem>>, vector<8x1xf32>
    %cst_20 = arith.constant 0.000000e+00 : f32
    %36 = vector.broadcast %cst_20 : f32 to vector<8x128xf32>
    %37 = arith.select %34, %15, %36 : vector<8x128xi1>, vector<8x128xf32>
    %cst_21 = arith.constant dense<0.000000e+00> : vector<8xf32>
    %38 = vector.multi_reduction <add>, %37, %cst_21 [1] : vector<8x128xf32> to vector<8xf32>
    %39 = vector.shape_cast %38 : vector<8xf32> to vector<8x1xf32>
    %40 = arith.addf %35, %39 : vector<8x1xf32>
    %c0_22 = arith.constant 0 : index
    %c0_23 = arith.constant 0 : index
    %41 = vector.load %arg8[%c0_22, %c0_23] : memref<8x1xf32, #tpu.memory_space<vmem>>, vector<8x1xf32>
    tpu.vector_store %arg8[%c0_22, %c0_23], %40 {strides = array<i32>} : memref<8x1xf32, #tpu.memory_space<vmem>>, vector<8x1xf32>,
    %c0_i32_24 = arith.constant 0 : i32
    %42 = arith.cmpi eq, %arg1, %c0_i32_24 : i32
    %43 = arith.extui %42 : i1 to i32
    %c0_i32_25 = arith.constant 0 : i32
    %44 = arith.cmpi ne, %43, %c0_i32_25 : i32
    scf.if %44 {
      %c0_26 = arith.constant 0 : index
      %c0_27 = arith.constant 0 : index
      %45 = vector.load %arg6[%c0_26, %c0_27] : memref<8x1xf32, #tpu.memory_space<vmem>>, vector<8x1xf32>
      %c0_28 = arith.constant 0 : index
      %c0_29 = arith.constant 0 : index
      %46 = vector.load %arg7[%c0_28, %c0_29] : memref<8x1xf32, #tpu.memory_space<vmem>>, vector<8x1xf32>
      %47 = math.log %46 : vector<8x1xf32>
      %48 = arith.addf %45, %47 : vector<8x1xf32>
      %c0_30 = arith.constant 0 : index
      %c0_31 = arith.constant 0 : index
      %49 = vector.load %arg8[%c0_30, %c0_31] : memref<8x1xf32, #tpu.memory_space<vmem>>, vector<8x1xf32>
      %50 = arith.subf %48, %49 : vector<8x1xf32>
      %c0_32 = arith.constant 0 : index
      %c0_33 = arith.constant 0 : index
      %51 = vector.load %arg5[%c0_32, %c0_33] : memref<8x1xf32, #tpu.memory_space<vmem>>, vector<8x1xf32>
      tpu.vector_store %arg5[%c0_32, %c0_33], %50 {strides = array<i32>} : memref<8x1xf32, #tpu.memory_space<vmem>>, vector<8x1xf32>,
    } else {
    }
    return
  }
  func.func @transform_0(%arg0: i32, %arg1: i32) -> (i32, i32) {
    %c0_i32 = arith.constant 0 : i32
    %c0_i32_0 = arith.constant 0 : i32
    return %arg0, %c0_i32 : i32, i32
  }
  func.func @transform_1(%arg0: i32, %arg1: i32) -> (i32, i32) {
    %c0_i32 = arith.constant 0 : i32
    %c0_i32_0 = arith.constant 0 : i32
    return %arg1, %c0_i32 : i32, i32
  }
  func.func @transform_2(%arg0: i32, %arg1: i32) -> (i32, i32) {
    %c0_i32 = arith.constant 0 : i32
    %c0_i32_0 = arith.constant 0 : i32
    return %arg0, %c0_i32 : i32, i32
  }
  func.func @transform_3(%arg0: i32, %arg1: i32) -> (i32, i32) {
    %c0_i32 = arith.constant 0 : i32
    %c0_i32_0 = arith.constant 0 : i32
    return %arg0, %c0_i32 : i32, i32
  }
}

</mosaic_0001>

<bundles_post_ra>
// kernel: tpu_custom_call.1
= control target key start
LH: loop header
LB: loop body
LE: loop exit
PB: predicated region body
PF: predicated region fallthrough
CT: control target
= control target key end

     0   :  { %vm39_vm0 = vcmask 261120   ;;  %vm18_vm1 = vcmask 7168   ;;  %v332_v0 = vmov 0.0|0.0   ;;  %v333_v4 = vmov 0.0   ;;  %s444_s1 = inlined_call_operand.vmem [shape: f32[128,32], index: 1, kind: input, shape index: {}]   ;;  %s445_s2 = inlined_call_operand.vmem [shape: s32[8,1], index: 2, kind: input, shape index: {}]   ;;  %s446_s0 = inlined_call_operand.vmem [shape: f32[8,32], index: 0, kind: input, shape index: {}]   ;;  %s447_s3 = inlined_call_operand.vmem [shape: f32[8,1], index: 3, kind: output, shape index: {}]  }
   0x1   :  { %287 = vmatprep.subr.bf16.mxu0 %v332_v0  ;;  %v23_v1 = vld [vmem:[%s444_s1] sm:$0xff]  ;;  %v24_v2 = vld [vmem:[%s444_s1 + $0x8] sm:$0xff]  ;;  %vm365_vm2 = vmpackc.low %vm39_vm0, %vm39_vm0  ;;  %20 = vst.msk [vmem:[#allocation3] sm:$0xff] %vm18_vm1, %v333_v4  ;;  %vm334_vm3 = vmmov 0   ;;  %v335_v6 = vmov 0   ;;  %v162_v31 = vlaneseq }
   0x2   :  { %21 = vst.msk [vmem:[#allocation4] sm:$0xff] %vm18_vm1, %v333_v4  ;;  %v288_v5 = vpack.c.bf16 %v24_v2, %v23_v1  ;;  %284 = vmatprep.mubr.msk.f32.mxu0 %vm334_vm3, %v333_v4  ;;  %325 = vset.pattern.permute.xlu1 %v335_v6  ;;  %v25_v7 = vld [vmem:[%s444_s1 + $0x10] sm:$0xff]  ;;  %v26_v8 = vld [vmem:[%s444_s1 + $0x18] sm:$0xff]  ;;  %v192_v9 = vld [vmem:[%s445_s2] sm:$0xff]  ;;  %v336_v30 = vmov -1e+30  }
   0x3   :  { %324 = vset.pattern.permute.xlu0 %v335_v6  ;;  %v292_v10 = vpack.c.bf16 %v26_v8, %v25_v7  ;;  %194 = vperm.xlu1 %325, %v192_v9   ;;  %v27_v11 = vld [vmem:[%s444_s1 + $0x20] sm:$0xff]  ;;  %v28_v12 = vld [vmem:[%s444_s1 + $0x28] sm:$0xff]  ;;  %v29_v14 = vld [vmem:[%s444_s1 + $0x30] sm:$0xff]  ;;  %19 = vst.msk [vmem:[#allocation2] sm:$0xff] %vm18_vm1, %v336_v30  ;;  %v163_v32 = vand.u32 127, %v162_v31 }
   0x4   :  { %290 = vmatpush3.bf16.xpose.msk.msra.mxu0 %vm365_vm2, %v288_v5  ;;  %v296_v13 = vpack.c.bf16 %v28_v12, %v27_v11  ;;  %v30_v15 = vld [vmem:[%s444_s1 + $0x38] sm:$0xff]  ;;  %v31_v17 = vld [vmem:[%s444_s1 + $0x40] sm:$0xff]  ;;  %v32_v18 = vld [vmem:[%s444_s1 + $0x48] sm:$0xff] }
   0x5   :  { %291 = vmatprep.subr.bf16.mxu0 %v332_v0  ;;  %v300_v16 = vpack.c.bf16 %v30_v15, %v29_v14  ;;  %v304_v19 = vpack.c.bf16 %v32_v18, %v31_v17  ;;  %v33_v20 = vld [vmem:[%s444_s1 + $0x50] sm:$0xff]  ;;  %v34_v21 = vld [vmem:[%s444_s1 + $0x58] sm:$0xff]  ;;  %v35_v23 = vld [vmem:[%s444_s1 + $0x60] sm:$0xff]  ;;  %vm167_vm4 = vcmp.lt.s32.totalorder %v163_v32, 16 }
   0x6   :  { %v308_v22 = vpack.c.bf16 %v34_v21, %v33_v20  ;;  %v36_v24 = vld [vmem:[%s444_s1 + $0x68] sm:$0xff]  ;;  %v37_v26 = vld [vmem:[%s444_s1 + $0x70] sm:$0xff]  ;;  %v38_v27 = vld [vmem:[%s444_s1 + $0x78] sm:$0xff] }
   0x7   :  { %v312_v25 = vpack.c.bf16 %v36_v24, %v35_v23  ;;  %v316_v28 = vpack.c.bf16 %v38_v27, %v37_v26  ;;  %v22_v29 = vld [vmem:[%s446_s0] sm:$0xff] }
   0x8   :  { %v176_v49 = vld [vmem:[#allocation3] sm:$0xff] }
   0x9   :  { %v197_v53 = vld [vmem:[#allocation4] sm:$0xff] }
   0xa   :  { %v169_v37 = vld [vmem:[#allocation2] sm:$0xff] }
   0xc   :  { %294 = vmatpush3.bf16.xpose.msk.msra.mxu0 %vm365_vm2, %v292_v10 }
   0xd   :  { %295 = vmatprep.subr.bf16.mxu0 %v332_v0 }
  0x14   :  { %298 = vmatpush3.bf16.xpose.msk.msra.mxu0 %vm365_vm2, %v296_v13 }
  0x15   :  { %299 = vmatprep.subr.bf16.mxu0 %v332_v0 }
  0x1c   :  { %302 = vmatpush3.bf16.xpose.msk.msra.mxu0 %vm365_vm2, %v300_v16 }
  0x1d   :  { %303 = vmatprep.subr.bf16.mxu0 %v332_v0 }
  0x24   :  { %306 = vmatpush3.bf16.xpose.msk.msra.mxu0 %vm365_vm2, %v304_v19 }
  0x25   :  { %307 = vmatprep.subr.bf16.mxu0 %v332_v0 }
  0x2c   :  { %310 = vmatpush3.bf16.xpose.msk.msra.mxu0 %vm365_vm2, %v308_v22 }
  0x2d   :  { %311 = vmatprep.subr.bf16.mxu0 %v332_v0 }
  0x34   :  { %314 = vmatpush3.bf16.xpose.msk.msra.mxu0 %vm365_vm2, %v312_v25 }
  0x35   :  { %315 = vmatprep.subr.bf16.mxu0 %v332_v0 }
  0x3c   :  { %318 = vmatpush3.bf16.xpose.msk.msra.mxu0 %vm365_vm2, %v316_v28 }
  0x43   :  { %285 = vmatmul.mubr.msk.f32.vlgmr.msra.gmra.mrb[0].mxu0 %vm39_vm0, %v22_v29 }
  0x82   :  { %v195_v44 = vpop.permute.xlu1 %194 }
  0x83   :  { %vm196_vm5 = vcmp.eq.s32.totalorder %v163_v32, %v195_v44 }
 0x116   :  { %v157_v33 = vpop.f32.mrb[0].mxu0 }
 0x117   :  { %v161_v34 = vmul.f32 20.0, %v157_v33  ;;  %v286_v35 = vpop.f32.mrb[1].mxu0 }
 0x119   :  { %v168_v36 = vsel %vm167_vm4, %v161_v34, -1e+30 }
 0x11a   :  { %170 = vmax.xlane.f32.xlu0 %v168_v36  ;;  %v198_v46 = vsel %vm196_vm5, %v168_v36, 0.0 }
 0x1a7   :  { %v171_v38 = vpop.xlane.xlu0 %170 }
 0x1a8   :  { %v172_v39 = vmax.f32 %v169_v37, %v171_v38 }
 0x1aa   :  { %v173_v40 = vsub.f32 %v169_v37, %v172_v39  ;;  %191 = vst.msk [vmem:[#allocation2] sm:$0xff] %vm18_vm1, %v172_v39  ;;  %180 = vperm.xlu0 %324, %v172_v39  }
 0x1ac   :  { %v174_v47 = vmul.f32 1.442695, %v173_v40 }
 0x1b1   :  { %v206_v59 = vld [vmem:[#allocation2] sm:$0xff] }
 0x229   :  { %v181_v41 = vpop.permute.xlu0 %180 }
 0x22a   :  { %v183_v42 = vsub.f32 %v168_v36, %v181_v41 }
 0x22c   :  { %v184_v43 = vmul.f32 1.442695, %v183_v42 }
 0x22e   :  { %326 = vpow2.f32 %v184_v43 }
 0x22f   :  { %328 = vpow2.f32 %v174_v47 }
 0x238   :  { %v327_v45 = vpop.eup %326 }
 0x239   :  { %186 = vadd.xlane.f32.xlu1 %v327_v45  ;;  %v329_v48 = vpop.eup %328 }
 0x23a   :  { %v177_v50 = vmul.f32 %v329_v48, %v176_v49 }
 0x23d   :  { %199 = vadd.xlane.f32.xlu1 %v198_v46 }
 0x2c6   :  { %v187_v51 = vpop.xlane.xlu1 %186 }
 0x2c7   :  { %v188_v52 = vadd.f32 %v187_v51, %v177_v50 }
 0x2c9   :  { %190 = vst.msk [vmem:[#allocation3] sm:$0xff] %vm18_vm1, %v188_v52 }
 0x2ca   :  { %v200_v54 = vpop.xlane.xlu1 %199 }
 0x2cb   :  { %v201_v55 = vadd.f32 %v200_v54, %v197_v53 }
 0x2cd   :  { %202 = vst.msk [vmem:[#allocation4] sm:$0xff] %vm18_vm1, %v201_v55 }
 0x2d0   :  { %v207_v56 = vld [vmem:[#allocation3] sm:$0xff] }
 0x2d1   :  { %330 = vlog2.f32 %v207_v56 }
 0x2d4   :  { %v211_v61 = vld [vmem:[#allocation4] sm:$0xff] }
 0x2db   :  { %v331_v57 = vpop.eup %330 }
 0x2dc   :  { %v209_v58 = vmul.f32 0.6931472, %v331_v57 }
 0x2de   :  { %v210_v60 = vadd.f32 %v209_v58, %v206_v59 }
 0x2e0   :  { %v212_v62 = vsub.f32 %v210_v60, %v211_v61 }
 0x2e2   :  { %213 = vst.msk [vmem:[%s447_s3] sm:$0xff] %vm18_vm1, %v212_v62 }

</bundles_post_ra>
